<compile_context>
chip_gen: v7x
topology: tpu7x:2x2x1
jax: 0.10.0
libtpu: 0.0.40
codegen_flags: <defaults>
</compile_context>

<pallas_src>
import jax
import jax.numpy as jnp
from jax import lax
from jax.experimental import pallas as pl
from jax.experimental.pallas import tpu as pltpu


def _channel_att_kernel(ab_ref, x_ref, o_ref):
    """out = sigmoid(x * a + b) * x, with per-row (= per-channel) a, b packed in ab."""
    x = x_ref[...]
    ab = ab_ref[...]                       # (row_tile, 2) f32
    a = ab[:, 0:1]                         # (row_tile, 1) broadcast over lanes
    b = ab[:, 1:2]
    z = x.astype(jnp.float32) * a + b      # fused BN + NAM channel weight (f32)
    # sigmoid(z) == 0.5 * (tanh(z/2) + 1): single EUP transcendental, numerically stable.
    gate = 0.5 * jnp.tanh(0.5 * z) + 0.5
    # Final multiply in the input dtype (keeps bf16 path narrow); no-op cast for f32.
    o_ref[...] = (gate.astype(x.dtype) * x).astype(o_ref.dtype)


def _round_down(x, m):
    return (x // m) * m


def channel_att(x, gamma, beta, running_mean, running_var, eps=1e-5,
                *, block_bytes_cap=4 << 20):
    """Pallas equivalent of Channel_Att.forward (eval-mode BatchNorm).

    x: (N, C, H, W); gamma/beta/running_mean/running_var: (C,)
    """
    N, C, H, W = x.shape
    hw = H * W

    # ---- fold BN (eval) + |gamma|-normalized channel weight into per-channel affine ----
    gamma32 = gamma.astype(jnp.float32)
    inv_std = lax.rsqrt(running_var.astype(jnp.float32) + jnp.float32(eps))
    scale = gamma32 * inv_std
    shift = beta.astype(jnp.float32) - running_mean.astype(jnp.float32) * scale
    w = jnp.abs(gamma32) / jnp.sum(jnp.abs(gamma32))
    a = scale * w                       # (C,)
    b = shift * w                       # (C,)

    # ---- lane-dense layout: per-channel rows on sublanes, spatial on lanes ----
    if hw % 128 == 0 or W % 128 != 0:
        # Preferred: (N*C, H*W). If hw isn't lane-aligned and W can't fix it either,
        # we knowingly accept masked stores on the last lane tile.
        rows, lanes = N * C, hw
        a_rows = jnp.tile(a, N)             # row r = n*C + c -> a[c]
        b_rows = jnp.tile(b, N)
    else:
        # hw not lane-aligned but W is: (N*C*H, W) keeps every store unmasked.
        rows, lanes = N * C * H, W
        a_rows = jnp.repeat(jnp.tile(a, N), H)
        b_rows = jnp.repeat(jnp.tile(b, N), H)
    x_flat = x.reshape(rows, lanes)
    ab_rows = jnp.stack([a_rows, b_rows], axis=-1)   # (rows, 2) f32, one DMA per row-tile

    # ---- tile sizes: full lane extent when possible, rows tiled under a per-block byte cap ----
    itemsize = jnp.dtype(x.dtype).itemsize
    if lanes * 8 * itemsize <= block_bytes_cap:
        hw_tile = lanes                                           # full-lane contiguous DMA
    else:
        hw_tile = max(_round_down(block_bytes_cap // (8 * itemsize), 128), 128)
    max_rows = max(block_bytes_cap // (hw_tile * itemsize), 1)
    if rows <= max_rows:
        row_tile = rows
    else:
        row_tile = max(_round_down(max_rows, 8), 8)

    # ---- guarantee >= 2 grid steps on a parallel axis (v7x has 2 TensorCores) ----
    if pl.cdiv(rows, row_tile) * pl.cdiv(lanes, hw_tile) == 1:
        if lanes % 256 == 0 and lanes >= 256:
            hw_tile = lanes // 2
        elif rows % 16 == 0 and rows >= 16:
            row_tile = rows // 2

    grid = (pl.cdiv(rows, row_tile), pl.cdiv(lanes, hw_tile))

    cost = pl.CostEstimate(
        flops=5 * x.size,
        transcendentals=x.size,
        bytes_accessed=2 * x.size * itemsize + 2 * rows * 4,
    )

    out_flat = pl.pallas_call(
        _channel_att_kernel,
        out_shape=jax.ShapeDtypeStruct((rows, lanes), x.dtype),
        grid_spec=pltpu.PrefetchScalarGridSpec(
            num_scalar_prefetch=0,
            grid=grid,
            in_specs=[
                pl.BlockSpec((row_tile, 2), lambda i, j: (i, 0)),         # packed a,b
                pl.BlockSpec((row_tile, hw_tile), lambda i, j: (i, j)),   # x
            ],
            out_specs=pl.BlockSpec((row_tile, hw_tile), lambda i, j: (i, j)),
        ),
        compiler_params=pltpu.CompilerParams(
            dimension_semantics=("parallel", "parallel"),
            vmem_limit_bytes=40 << 20,   # blocks <= 4 MiB each; ~16 MiB double-buffered, v7x-safe
        ),
        cost_estimate=cost,
    )(ab_rows, x_flat)

    return out_flat.reshape(N, C, H, W)


def channel_att_ref(x, gamma, beta, running_mean, running_var, eps=1e-5):
    """Pure-JAX reference matching the PyTorch forward (eval-mode BN)."""
    xf = x.astype(jnp.float32)
    g = gamma.astype(jnp.float32)
    inv_std = 1.0 / jnp.sqrt(running_var.astype(jnp.float32) + eps)
    x_bn = (xf - running_mean.astype(jnp.float32)[None, :, None, None]) \
        * (g * inv_std)[None, :, None, None] \
        + beta.astype(jnp.float32)[None, :, None, None]
    w = jnp.abs(g) / jnp.sum(jnp.abs(g))
    z = x_bn * w[None, :, None, None]
    return (jax.nn.sigmoid(z) * xf).astype(x.dtype)


def _run_case(key, shape, dtype=jnp.float32, rtol=1e-5, atol=1e-5):
    N, C, H, W = shape
    kx, kg, kb, km, kv = jax.random.split(key, 5)
    x = jax.random.normal(kx, (N, C, H, W), dtype=jnp.float32).astype(dtype)
    gamma = jax.random.normal(kg, (C,), dtype=jnp.float32)
    beta = jax.random.normal(kb, (C,), dtype=jnp.float32)
    mean = jax.random.normal(km, (C,), dtype=jnp.float32)
    var = jax.random.uniform(kv, (C,), dtype=jnp.float32, minval=0.5, maxval=2.0)

    out = channel_att(x, gamma, beta, mean, var)
    out = jax.block_until_ready(out)
    ref = channel_att_ref(x, gamma, beta, mean, var)

    assert out.shape == ref.shape, (out.shape, ref.shape)
    o32 = out.astype(jnp.float32)
    r32 = ref.astype(jnp.float32)
    err = float(jnp.max(jnp.abs(o32 - r32)))
    assert jnp.allclose(o32, r32, rtol=rtol, atol=atol), \
        f"max abs err {err} for shape {shape} dtype {dtype}"


if __name__ == "__main__":
    key = jax.random.PRNGKey(0)
    k1, k2, k3 = jax.random.split(key, 3)

    # Small shape matching the module spec (N=2, C=4, H=W=16): lane axis split for 2 TCs.
    _run_case(k1, (2, 4, 16, 16))

    # Larger shape exercising full-lane blocks + row tiling (rows=32, lanes=4096).
    _run_case(k2, (2, 16, 64, 64))

    # bf16 I/O path: z in f32, final gate*x multiply and store in bf16.
    _run_case(k3, (2, 8, 32, 32), dtype=jnp.bfloat16, rtol=5e-2, atol=5e-2)

    print("KERNEL_OK")
</pallas_src>

<mosaic_0001>
module attributes {stable_mosaic.version = 11 : i64} {
  func.func @_channel_att_kernel(%arg0: i32, %arg1: i32, %arg2: memref<8x2xf32, #tpu.memory_space<vmem>>, %arg3: memref<8x128xf32, #tpu.memory_space<vmem>>, %arg4: memref<8x128xf32, #tpu.memory_space<vmem>>) attributes {dimension_semantics = [#tpu.dimension_semantics<parallel>, #tpu.dimension_semantics<parallel>], iteration_bounds = array<i64: 1, 2>, scalar_prefetch = 0 : i64, scratch_operands = 0 : i64, tpu.core_type = #tpu.core_type<tc>, window_params = [{transform_indices = @transform_0, window_bounds = array<i64: 8, 2>}, {transform_indices = @transform_1, window_bounds = array<i64: 8, 128>}, {transform_indices = @transform_2, window_bounds = array<i64: 8, 128>}]} {
    %c0 = arith.constant 0 : index
    %c0_0 = arith.constant 0 : index
    %0 = vector.load %arg3[%c0, %c0_0] : memref<8x128xf32, #tpu.memory_space<vmem>>, vector<8x128xf32>
    %c0_1 = arith.constant 0 : index
    %c0_2 = arith.constant 0 : index
    %1 = vector.load %arg2[%c0_1, %c0_2] : memref<8x2xf32, #tpu.memory_space<vmem>>, vector<8x2xf32>
    %2 = vector.extract_strided_slice %1 {offsets = [0, 0], sizes = [8, 1], strides = [1, 1]} : vector<8x2xf32> to vector<8x1xf32>
    %3 = vector.extract_strided_slice %1 {offsets = [0, 1], sizes = [8, 1], strides = [1, 1]} : vector<8x2xf32> to vector<8x1xf32>
    %4 = vector.broadcast %2 : vector<8x1xf32> to vector<8x128xf32>
    %5 = arith.mulf %0, %4 : vector<8x128xf32>
    %6 = vector.broadcast %3 : vector<8x1xf32> to vector<8x128xf32>
    %7 = arith.addf %5, %6 : vector<8x128xf32>
    %cst = arith.constant 5.000000e-01 : f32
    %8 = vector.broadcast %cst : f32 to vector<8x128xf32>
    %9 = arith.mulf %8, %7 : vector<8x128xf32>
    %10 = math.tanh %9 : vector<8x128xf32>
    %cst_3 = arith.constant 5.000000e-01 : f32
    %11 = vector.broadcast %cst_3 : f32 to vector<8x128xf32>
    %12 = arith.mulf %11, %10 : vector<8x128xf32>
    %cst_4 = arith.constant 5.000000e-01 : f32
    %13 = vector.broadcast %cst_4 : f32 to vector<8x128xf32>
    %14 = arith.addf %12, %13 : vector<8x128xf32>
    %15 = arith.mulf %14, %0 : vector<8x128xf32>
    %c0_5 = arith.constant 0 : index
    %c0_6 = arith.constant 0 : index
    %16 = vector.load %arg4[%c0_5, %c0_6] : memref<8x128xf32, #tpu.memory_space<vmem>>, vector<8x128xf32>
    tpu.vector_store %arg4[%c0_5, %c0_6], %15 {strides = array<i32>} : memref<8x128xf32, #tpu.memory_space<vmem>>, vector<8x128xf32>,
    return
  }
  func.func @transform_0(%arg0: i32, %arg1: i32) -> (i32, i32) {
    %c0_i32 = arith.constant 0 : i32
    %c0_i32_0 = arith.constant 0 : i32
    return %arg0, %c0_i32 : i32, i32
  }
  func.func @transform_1(%arg0: i32, %arg1: i32) -> (i32, i32) {
    %c0_i32 = arith.constant 0 : i32
    return %arg0, %arg1 : i32, i32
  }
  func.func @transform_2(%arg0: i32, %arg1: i32) -> (i32, i32) {
    %c0_i32 = arith.constant 0 : i32
    return %arg0, %arg1 : i32, i32
  }
}

</mosaic_0001>

<bundles_post_ra>
// kernel: tpu_custom_call.1
= control target key start
LH: loop header
LB: loop body
LE: loop exit
PB: predicated region body
PF: predicated region fallthrough
CT: control target
= control target key end

     0   :  { %7 = vsyncpa [#allocation3], 0  ;;  %s716_s0 = inlined_call_operand.vmem [shape: f32[8,2], index: 0, kind: input, shape index: {}]   ;;  %s717_s1 = inlined_call_operand.hbm [shape: f32[8,256], index: 1, kind: input, shape index: {}]   ;;  %s718_s2 = inlined_call_operand.hbm [shape: f32[8,256], index: 2, kind: output, shape index: {}]  }
   0x1   :  { %9 = vsyncpa [#allocation3 + $0x1], 0 }
   0x2   :  { %10 = vsyncpa [#allocation4], 0 }
   0x3   :  { %12 = vsyncpa [#allocation4 + $0x1], 0  ;;  %s541_s9 = smov 0   ;;  %s543_s10 = smov 0  }
   0x4   :  { %s545_s11 = smov 0   ;;  %s547_s12 = smov 0  }
   0x5   :  { %s549_s13 = smov 0   ;;  %s551_s14 = smov 0  }
   0x6 LB: > { %s326_s15 = sadd.s32 4294967295, %s520_s14   ;;  %s327_s16 = sadd.s32 4294967294, %s520_s14   ;;  %s520_s14 = sphi %s551_s14, %s18_s14   ;;  %s516_s13 = sphi %s549_s13, %s734_s13   ;;  %s512_s12 = sphi %s547_s12, %s733_s12   ;;  %s508_s11 = sphi %s545_s11, %s732_s11   ;;  %s504_s10 = sphi %s543_s10, %s731_s10   ;;  %s500_s9 = sphi %s541_s9, %s730_s9  }
   0x7   : > { %s27_s17 = sadd.s32 1, %s516_s13  ;;  %s65_s18 = sadd.s32 1, %s508_s11 }
   0x8   : > { %p28_p0 = scmp.ge.s32.totalorder %s27_s17, 2  ;;  %p72_p1 = scmp.ne.s32.totalorder %s508_s11, %s504_s10 }
   0x9   : > { %p73_p2 = scmp.eq.s32.totalorder %s520_s14, 0  ;;  %p78_p3 = scmp.ne.s32.totalorder %s504_s10, %s500_s9 }
   0xa   : > { %s736_s17 = smov (%p28_p0, %s27_s17), 0  ;;  %p79_p5 = scmp.eq.s32.totalorder %s326_s15, 0 }
   0xb   : > { %p582_p4 = por %p73_p2, %p72_p1  ;;  %s61_s20 = ssub.s32 %s516_s13, %s736_s17 }
   0xc   : > { %p104_p6 = scmp.eq.s32.totalorder %s326_s15, 1  ;;  %p63_p7 = scmp.eq.s32.totalorder %s61_s20, 0 }
   0xd   : > { %p588_p8 = por %p79_p5, %p78_p3  ;;  %p110_p10 = scmp.eq.s32.totalorder %s327_s16, 1 }
   0xe   : > { %p592_p9 = por %p104_p6, %p72_p1  ;;  %p352_p13 = scmp.lt.s32.totalorder %s520_s14, 2 }
   0xf   : > { %s597_s23 = scalar_select %p63_p7, %s508_s11, %s65_s18  }
  0x10   : > { %s722_s22 = scalar_select %p592_p9, 1, 0 }
  0x11   : > { %p599_p11 = por %p110_p10, %p78_p3  ;;  %s137_s25 = sand.u32 1, %s508_s11  }
  0x12   : > { %s331_s26 = sshll.u32 %s137_s25, 3  ;;  %s332_s27 = sshll.u32 %s516_s13, 7 }
  0x13   : > { %s723_s24 = scalar_select %p599_p11, 1, 0 }
  0x14   : > { %s610_s30 = scalar_lea.hbm %s717_s1, %s332_s27  ;;  %s141_s3 = scalar_lea.vmem [#allocation2], %s331_s26 }
  0x15   : > { %s150_s4 = sshll.u32 %s141_s3, 4  ;;  %p616_p0 = pnand %p352_p13, %p582_p4  ;;  %s612_s4 = int_to_ptr.vmem [resolvable:$true] %s150_s4 }
  0x16   : > { %s138_s6 = scalar_lea.sflag [#allocation3], %s137_s25  ;;  %s408_s7 = scalar_lea.hbm %s610_s30, 128 }
  0x17   : > { %p409_p3 = scmp.ne.s32.totalorder %s610_s30, %s408_s7  ;;  %p410_p5 = pneg %p616_p0 }
  0x18   : > { %s413_s16 = scalar_lea.hbm %s717_s1, 256  ;;  %p414_p4 = scmp.lt.u32.totalorder %s610_s30, %s717_s1 }
  0x19   : > { %p411_p6 = pnand %p410_p5, %p409_p3  ;;  %p415_p10 = scmp.lt.u32.totalorder %s413_s16, %s408_s7 }
  0x1a   : > { %p417_p12 = scmp.lt.u32.totalorder %s408_s7, %s610_s30 }
  0x1b   : > { %p412_p7 = pneg %p411_p6  ;;  %p416_p13 = por %p415_p10, %p414_p4 }
  0x1d   : > { %p418_p1 = por %p417_p12, %p416_p13 }
  0x1f   : > { %p419_p2 = pnand %p418_p1, %p412_p7 }
  0x21   : > { %422 = shalt.err (!%p419_p2)
}
  0x22   : > { %s423_s20 = scalar_lea.vmem %s612_s4, 128  ;;  %s522_s25 = smov [#allocation2]  }
  0x23   : > { %p424_p3 = scmp.ne.s32.totalorder %s612_s4, %s423_s20  ;;  %s428_s26 = sshll.u32 %s522_s25, 4  ;;  %s429_s26 = int_to_ptr.vmem [resolvable:$false] %s428_s26 }
  0x24   : > { %s430_s27 = scalar_lea.vmem %s429_s26, 256  ;;  %p431_p9 = scmp.lt.s32.totalorder %s612_s4, %s429_s26 }
  0x25   : > { %p426_p6 = pnand %p424_p3, %p410_p5  ;;  %p432_p4 = scmp.lt.s32.totalorder %s430_s27, %s423_s20 }
  0x27   : > { %p427_p11 = pneg %p426_p6  ;;  %p433_p10 = por %p432_p4, %p431_p9 }
  0x29   : > { %p434_p12 = pnand %p433_p10, %p427_p11 }
  0x2b   : > { %437 = shalt.err (!%p434_p12)
}
  0x2c   : > { %347 = dma.hbm_to_vmem [thread:$0]  (!%p616_p0), %s610_s30, 128, %s612_s4, %s138_s6  }
  0x2d   : > { %p725_p1 = scmp.lt.s32.totalorder %s520_s14, 3  ;;  %p726_p2 = scmp.ge.s32.totalorder %s520_s14, 1 }
  0x2f   : > { %p156_p5 = pnand %p726_p2, %p725_p1 }
  0x30   : > { %s652_s28 = sand.u32 (!%p156_p5), 1, %s504_s10  }
  0x31   : > { %159 = sbr.rel (%p156_p5) target bundleno = 227 (0xe3), region = 28  ;;  %s334_s29 = sshll.u32 (!%p156_p5), %s652_s28, 3 }
  0x32   : > { %s162_s3 = scalar_lea.sflag (!%p156_p5), [#allocation3], %s652_s28  ;;  %s165_s7 = scalar_lea.vmem (!%p156_p5), [#allocation2], %s334_s29 }
  0x38   : > { %491 = dma.done.wait (%p588_p8), %s162_s3, 128  }
  0x39   : > { %493 = vsyncadd (%p588_p8), %s162_s3, 4294967168  ;;  %v523_v0 = vmov 0   ;;  %v195_v1 = vld [vmem:[%s716_s0] sm:$0xff]  ;;  %v524_v2 = vmov 1   ;;  %s337_s21 = sshll.u32 %s512_s12, 7  ;;  %s189_s5 = scalar_lea.vmem [#allocation5], %s334_s29 }
  0x3a   : > { %404 = vset.pattern.permute.xlu0 %v523_v0  ;;  %v194_v4 = vld [vmem:[%s165_s7] sm:$0xff]  ;;  %s229_s6 = sshll.u32 %s189_s5, 4  ;;  %s667_s16 = scalar_lea.hbm %s718_s2, %s337_s21  ;;  %s669_s6 = int_to_ptr.vmem [resolvable:$true] %s229_s6 }
  0x3b   : > { %198 = vperm.xlu0 %404, %v195_v1   ;;  %s214_s18 = scalar_lea.sflag [#allocation4], %s652_s28  ;;  %s438_s19 = scalar_lea.vmem %s669_s6, 128 }
  0x3c   : > { %p439_p8 = scmp.ne.s32.totalorder %s669_s6, %s438_s19  ;;  %p727_p9 = scmp.ne.s32.totalorder %s722_s22, 0 }
  0x3d   : > { %s525_s12 = smov [#allocation5]  }
  0x3e   : > { %p440_p11 = pnand %p439_p8, %p727_p9  ;;  %s442_s20 = sshll.u32 %s525_s12, 4  ;;  %s443_s20 = int_to_ptr.vmem [resolvable:$false] %s442_s20 }
  0x3f   : > { %405 = vset.pattern.permute.xlu0 %v524_v2  ;;  %s444_s25 = scalar_lea.vmem %s443_s20, 256  ;;  %p445_p7 = scmp.lt.s32.totalorder %s669_s6, %s443_s20 }
  0x40   : > { %203 = vperm.xlu0 %405, %v195_v1   ;;  %p441_p0 = pneg %p440_p11  ;;  %p446_p13 = scmp.lt.s32.totalorder %s444_s25, %s438_s19 }
  0x42   : > { %p447_p3 = por %p446_p13, %p445_p7 }
  0x44   : > { %p448_p6 = pnand %p447_p3, %p441_p0 }
  0xba   : > { %v199_v3 = vpop.permute.xlu0 %198 }
  0xbb   : > { %v201_v5 = vmul.f32 %v199_v3, %v194_v4 }
  0xbf   : > { %v204_v6 = vpop.permute.xlu0 %203 }
  0xc0   : > { %v206_v7 = vadd.f32 %v204_v6, %v201_v5 }
  0xc2   : > { %v207_v8 = vmul.f32 0.5, %v206_v7 }
  0xc4   : > { %406 = vtanh.f32 %v207_v8 }
  0xce   : > { %v407_v9 = vpop.eup %406 }
  0xcf   : > { %v209_v10 = vmul.f32 0.5, %v407_v9 }
  0xd1   : > { %v210_v11 = vadd.f32 0.5, %v209_v10 }
  0xd3   : > { %v211_v12 = vmul.f32 %v210_v11, %v194_v4 }
  0xd5   : > { %212 = vst [vmem:[%s189_s5] sm:$0xff] %v211_v12 }
  0xd6   : > { %451 = shalt.err (!%p448_p6)
}
  0xd7   : > { %s452_s26 = scalar_lea.hbm %s667_s16, 128  ;;  %s456_s29 = scalar_lea.hbm %s718_s2, 256 }
  0xd8   : > { %p453_p4 = scmp.ne.s32.totalorder %s667_s16, %s452_s26  ;;  %p457_p1 = scmp.lt.u32.totalorder %s667_s16, %s718_s2 }
  0xd9   : > { %p458_p2 = scmp.lt.u32.totalorder %s456_s29, %s452_s26  ;;  %p460_p8 = scmp.lt.u32.totalorder %s452_s26, %s667_s16 }
  0xda   : > { %p454_p10 = pnand %p453_p4, %p727_p9 }
  0xdb   : > { %p459_p5 = por %p458_p2, %p457_p1 }
  0xdc   : > { %p455_p12 = pneg %p454_p10 }
  0xdd   : > { %p461_p11 = por %p460_p8, %p459_p5 }
  0xdf   : > { %p462_p0 = pnand %p461_p11, %p455_p12 }
  0xe1   : > { %465 = shalt.err (!%p462_p0)
}
  0xe2   : > { %342 = dma.vmem_to_hbm [thread:$0]  (%p727_p9), %s669_s6, 128, %s667_s16, %s214_s18  }
  0xe3 PF: > { %s241_s30 = sand.u32 1, %s500_s9   ;;  %p728_p7 = scmp.ne.s32.totalorder %s723_s24, 0 }
  0xe4   : > { %p729_p13 = scmp.ge.s32.totalorder %s520_s14, 2  ;;  %s242_s4 = scalar_lea.sflag [#allocation4], %s241_s30 }
  0xe6   : > { %p349_p3 = pnand %p729_p13, %p728_p7 }
  0xe8   : > { %495 = dma.done.wait (!%p349_p3), %s242_s4, 128  }
  0xe9   : > { %497 = vsyncadd (!%p349_p3), %s242_s4, 4294967168  ;;  %s18_s14 = sadd.s32 1, %s520_s14   ;;  %s730_s9 = smov %s504_s10 }
  0xea   : > { %p15_p6 = scmp.ge.s32.totalorder %s18_s14, 4   ;;  %s731_s10 = smov %s508_s11 }
  0xeb   : > { %s732_s11 = smov %s597_s23  ;;  %s733_s12 = smov %s516_s13 }
  0xec   : > { %s734_s13 = smov %s736_s17  ;;  %17 = sbr.rel (!%p15_p6) target bundleno = 6 (0x6), region = 76 }
  0xf3   :  { %247 = vsyncpa [#allocation3], 1 }
  0xf4   :  { %249 = vsyncpa [#allocation3 + $0x1], 1 }
  0xf5   :  { %250 = vsyncpa [#allocation4], 1 }
  0xf6   :  { %252 = vsyncpa [#allocation4 + $0x1], 1 }

</bundles_post_ra>
